<compile_context>
chip_gen: v5e
topology: v5e:2x2
jax: 0.10.0
libtpu: 0.0.40
codegen_flags: <defaults>
</compile_context>

<pallas_src>
import math

import jax
import jax.numpy as jnp
from jax.experimental import pallas as pl
from jax.experimental.pallas import tpu as pltpu

# ~2 MiB of data per block buffer.  With double buffering the in+out buffers
# cost 4x this (8 MiB) of scoped VMEM — safe under the 16 MiB (v5e), 32 MiB
# (v6e/v7x) scoped defaults and far under v7x's 64 MiB physical VMEM.  If this
# is ever raised, keep 4 * block_bytes <= ~24 MiB or set vmem_limit_bytes.
_TARGET_BLOCK_BYTES = 2 * 1024 * 1024


def _h_swish_kernel(x_ref, o_ref):
    # h_swish(x) = x * clamp(x + 3, 0, 6) / 6, computed in the input dtype
    # (matches framework hardswish semantics for bf16).
    x = x_ref[...]
    dt = x.dtype
    three = jnp.asarray(3.0, dt)
    zero = jnp.asarray(0.0, dt)
    six = jnp.asarray(6.0, dt)
    inv6 = jnp.asarray(1.0 / 6.0, dt)
    o_ref[...] = (x * (jnp.clip(x + three, zero, six) * inv6)).astype(o_ref.dtype)


def _pick_lane(total: int):
    """Largest lane-dense last dim (multiple of 128) that divides `total`."""
    for lane in (512, 256, 128):
        if total % lane == 0:
            return lane
    return None


def _pick_block_rows(rows: int, itemsize: int, lane: int) -> int:
    # Fixed ~2 MiB of bytes per block regardless of dtype / lane width.
    target = max(8, (_TARGET_BLOCK_BYTES // (itemsize * lane)) // 8 * 8)
    if rows <= 8:
        return rows  # single tiny block (block rows == full array rows)
    if rows <= target:
        # Small slab: split into (at least) two blocks so both v7x
        # TensorCores and both HBM streams get work; no-op cost on v5e/v6e.
        return max(8, ((pl.cdiv(rows, 2) + 7) // 8) * 8)
    return target


def h_swish(x: jax.Array, *, donate: bool = False,
            _block_rows_override: int | None = None) -> jax.Array:
    """Elementwise hard-swish (x * relu6(x+3)/6) via a Pallas TPU kernel.

    donate=True aliases the kernel input buffer to the output
    (input_output_aliases={0: 0}); only use it when the caller no longer
    needs `x` after this call.
    """
    orig_shape = x.shape
    total = math.prod(orig_shape) if orig_shape else 1
    if total == 0:
        return x

    lane = _pick_lane(total)
    needs_pad = lane is None
    if needs_pad:
        # Awkward element count (not a multiple of 128): small tail pad up to
        # a lane boundary.  This costs one extra HBM pass each for the pad and
        # the final slice; it only triggers for totals where no metadata-only
        # lane-dense reshape exists.  Safe: h_swish(0) == 0, tail sliced off.
        lane = 512
        rows = pl.cdiv(total, lane)
        flat = jnp.pad(x.reshape(-1), (0, rows * lane - total))
        x2d = flat.reshape(rows, lane)
    else:
        rows = total // lane
        x2d = x.reshape(rows, lane)  # metadata-only reshape, no HBM copy

    itemsize = jnp.dtype(x.dtype).itemsize
    block_rows = (_block_rows_override if _block_rows_override is not None
                  else _pick_block_rows(rows, itemsize, lane))

    # `rows` need not be a multiple of `block_rows`: Pallas masks the ragged
    # last block (OOB rows are loaded as garbage but never stored), which is
    # safe for this purely elementwise kernel.
    grid = (pl.cdiv(rows, block_rows),)

    out2d = pl.pallas_call(
        _h_swish_kernel,
        out_shape=jax.ShapeDtypeStruct((rows, lane), x.dtype),
        grid=grid,
        in_specs=[pl.BlockSpec((block_rows, lane), lambda i: (i, 0))],
        out_specs=pl.BlockSpec((block_rows, lane), lambda i: (i, 0)),
        compiler_params=pltpu.CompilerParams(
            dimension_semantics=("parallel",),
        ),
        input_output_aliases=({0: 0} if donate else {}),
    )(x2d)

    if needs_pad:
        return out2d.reshape(-1)[:total].reshape(orig_shape)
    return out2d.reshape(orig_shape)


def _h_swish_ref(x):
    return x * (jnp.clip(x + 3.0, 0.0, 6.0) / 6.0)


if __name__ == "__main__":
    key = jax.random.PRNGKey(0)
    k1, k2, k3, k4 = jax.random.split(key, 4)

    # Primary NCHW activation shape consistent with the module's usage.
    x = jax.random.normal(k1, (2, 4, 16, 16), dtype=jnp.float32) * 5.0
    y = jax.block_until_ready(h_swish(x))
    assert y.shape == x.shape and y.dtype == x.dtype
    assert jnp.allclose(y, _h_swish_ref(x), atol=1e-6), "mismatch (f32 aligned)"

    # Multiple of 128 but not 512 -> lane=128 path, zero wrapper copies.
    x128 = jax.random.normal(k2, (1, 3, 8, 16), dtype=jnp.float32) * 5.0
    y128 = jax.block_until_ready(h_swish(x128))
    assert jnp.allclose(y128, _h_swish_ref(x128), atol=1e-6), "mismatch (lane128)"

    # Awkward element count -> small-pad fallback path.
    x_odd = jax.random.normal(k3, (3, 5, 7, 9), dtype=jnp.float32) * 5.0
    y_odd = jax.block_until_ready(h_swish(x_odd))
    assert jnp.allclose(y_odd, _h_swish_ref(x_odd), atol=1e-6), "mismatch (padded)"

    # Medium slab: grid >= 2 (both v7x TCs) and a forced ragged last block.
    x_med = jax.random.normal(k4, (8, 8, 32, 32), dtype=jnp.float32) * 5.0
    y_med = jax.block_until_ready(h_swish(x_med))
    assert jnp.allclose(y_med, _h_swish_ref(x_med), atol=1e-6), "mismatch (grid2)"
    y_rag = jax.block_until_ready(h_swish(x_med, _block_rows_override=48))
    assert jnp.allclose(y_rag, _h_swish_ref(x_med), atol=1e-6), "mismatch (ragged)"

    # bf16 path (dtype-matched constants, block bytes held at ~2 MiB).
    x_bf = x.astype(jnp.bfloat16)
    y_bf = jax.block_until_ready(h_swish(x_bf))
    assert y_bf.dtype == jnp.bfloat16
    assert jnp.allclose(
        y_bf.astype(jnp.float32),
        _h_swish_ref(x_bf.astype(jnp.float32)),
        atol=5e-2,
    ), "mismatch (bf16)"

    print("KERNEL_OK")
</pallas_src>

<mosaic_0001>
module attributes {stable_mosaic.version = 11 : i64} {
  func.func @_h_swish_kernel(%arg0: i32, %arg1: memref<4x512xf32, #tpu.memory_space<vmem>>, %arg2: memref<4x512xf32, #tpu.memory_space<vmem>>) attributes {dimension_semantics = [#tpu.dimension_semantics<parallel>], iteration_bounds = array<i64: 1>, scalar_prefetch = 0 : i64, scratch_operands = 0 : i64, tpu.core_type = #tpu.core_type<tc>, window_params = [{transform_indices = @transform_0, window_bounds = array<i64: 4, 512>}, {transform_indices = @transform_1, window_bounds = array<i64: 4, 512>}]} {
    %c0 = arith.constant 0 : index
    %c0_0 = arith.constant 0 : index
    %0 = vector.load %arg1[%c0, %c0_0] : memref<4x512xf32, #tpu.memory_space<vmem>>, vector<4x512xf32>
    %cst = arith.constant 3.000000e+00 : f32
    %1 = vector.broadcast %cst : f32 to vector<4x512xf32>
    %2 = arith.addf %0, %1 : vector<4x512xf32>
    %cst_1 = arith.constant 0.000000e+00 : f32
    %cst_2 = arith.constant 6.000000e+00 : f32
    %3 = vector.broadcast %cst_1 : f32 to vector<4x512xf32>
    %4 = arith.maximumf %3, %2 : vector<4x512xf32>
    %5 = vector.broadcast %cst_2 : f32 to vector<4x512xf32>
    %6 = arith.minimumf %5, %4 : vector<4x512xf32>
    %cst_3 = arith.constant 0.166666672 : f32
    %7 = vector.broadcast %cst_3 : f32 to vector<4x512xf32>
    %8 = arith.mulf %6, %7 : vector<4x512xf32>
    %9 = arith.mulf %0, %8 : vector<4x512xf32>
    %c0_4 = arith.constant 0 : index
    %c0_5 = arith.constant 0 : index
    %10 = vector.load %arg2[%c0_4, %c0_5] : memref<4x512xf32, #tpu.memory_space<vmem>>, vector<4x512xf32>
    tpu.vector_store %arg2[%c0_4, %c0_5], %9 {strides = array<i32>} : memref<4x512xf32, #tpu.memory_space<vmem>>, vector<4x512xf32>,
    return
  }
  func.func @transform_0(%arg0: i32) -> (i32, i32) {
    %c0_i32 = arith.constant 0 : i32
    %c0_i32_0 = arith.constant 0 : i32
    return %arg0, %c0_i32 : i32, i32
  }
  func.func @transform_1(%arg0: i32) -> (i32, i32) {
    %c0_i32 = arith.constant 0 : i32
    %c0_i32_0 = arith.constant 0 : i32
    return %arg0, %c0_i32 : i32, i32
  }
}

</mosaic_0001>

<bundles_post_ra>
// kernel: tpu_custom_call.1
= control target key start
LH: loop header
LB: loop body
LE: loop exit
PB: predicated region body
PF: predicated region fallthrough
CT: control target
= control target key end

     0   :  { %6 = vsyncpa [#allocation3], 0  ;;  %s126_s0 = inlined_call_operand.hbm [shape: f32[4,512], index: 0, kind: input, shape index: {}]   ;;  %s127_s1 = inlined_call_operand.hbm [shape: f32[4,512], index: 1, kind: output, shape index: {}]  }
   0x1   :  { %7 = vsyncpa [#allocation4], 0  ;;  %s13_s8 = sshll.u32 %s126_s0, 4  ;;  %s108_s9 = smov [#allocation2]   ;;  %s14_s8 = int_to_ptr.hbm [resolvable:$true] %s13_s8 }
   0x2   :  { %s15_s10 = sshll.u32 %s108_s9, 4  ;;  %s16_s10 = int_to_ptr.vmem [resolvable:$true] %s15_s10 }
   0x3   :  { %18 = dma.hbm_to_vmem [thread:$0]  %s14_s8, 256, %s16_s10, [#allocation3]  }
   0x4   :  { %104 = dma.done.wait [#allocation3], 256  }
   0x5   :  { %105 = vsyncadd [#allocation3], 4294967040  ;;  %v23_v0 = vld [vmem:[#allocation2] sm:$0xff]  ;;  %v24_v1 = vld [vmem:[#allocation2 + $0x8] sm:$0xff]  ;;  %s109_s11 = smov [#allocation5]   ;;  %s44_s14 = sshll.u32 %s127_s1, 4  ;;  %s45_s14 = int_to_ptr.hbm [resolvable:$true] %s44_s14 }
   0x6   :  { %v25_v2 = vadd.f32 3.0, %v23_v0  ;;  %v26_v3 = vadd.f32 3.0, %v24_v1  ;;  %s42_s12 = sshll.u32 %s109_s11, 4  ;;  %s43_s12 = int_to_ptr.vmem [resolvable:$true] %s42_s12 }
   0x8   :  { %v27_v4 = vmax.f32 %v25_v2, 0.0  ;;  %v28_v5 = vmax.f32 %v26_v3, 0.0 }
   0xa   :  { %v29_v6 = vmin.f32 %v27_v4, 6.0  ;;  %v30_v7 = vmin.f32 %v28_v5, 6.0 }
   0xc   :  { %v31_v8 = vmul.f32 0.16666667, %v29_v6  ;;  %v32_v9 = vmul.f32 0.16666667, %v30_v7 }
   0xe   :  { %v33_v10 = vmul.f32 %v31_v8, %v23_v0  ;;  %v34_v11 = vmul.f32 %v32_v9, %v24_v1 }
  0x10   :  { %35 = vst [vmem:[#allocation5] sm:$0xff] %v33_v10 }
  0x11   :  { %36 = vst [vmem:[#allocation5 + $0x8] sm:$0xff] %v34_v11 }
  0x12   :  { %47 = dma.vmem_to_hbm [thread:$0]  %s43_s12, 256, %s45_s14, [#allocation4]  }
  0x13   :  { %106 = dma.done.wait [#allocation4], 256  }
  0x14   :  { %107 = vsyncadd [#allocation4], 4294967040 }
  0x15   :  { %52 = vsyncpa [#allocation3], 1 }
  0x16   :  { %53 = vsyncpa [#allocation4], 1 }

</bundles_post_ra>
